<compile_context>
chip_gen: v5e
topology: v5e:2x2
jax: 0.10.0
libtpu: 0.0.40
codegen_flags: <defaults>
</compile_context>

<pallas_src>
import functools

import jax
import jax.numpy as jnp
from jax.experimental import pallas as pl
from jax.experimental.pallas import tpu as pltpu

BN_EPS = 1e-5  # PyTorch BatchNorm1d default eps


# --------------------------------- kernel ---------------------------------

def vae_forward_kernel(
    E,  # static: encoded size (bound via functools.partial)
    # inputs
    x_ref, eps_ref, mask_ref,
    w1_ref, b1_ref,
    w2_ref, b2_ref,
    wmv_ref, bmv_ref,
    wd1_ref, bd1_ref,
    wd2_ref, bd2_ref,
    wdo_ref, bdo_ref,
    # outputs
    recon_ref, muvar_ref,
):
    x = x_ref[...]

    # ---------------- encoder (BN already folded into W/b; Dropout = identity in eval) ----
    h = jnp.maximum(
        jnp.dot(x, w1_ref[...], preferred_element_type=jnp.float32) + b1_ref[...], 0.0)
    h = jnp.maximum(
        jnp.dot(h, w2_ref[...], preferred_element_type=jnp.float32) + b2_ref[...], 0.0)

    # fused fc_mu || fc_var : one matmul, one lane-dense [B, 2E] output
    mv = jnp.dot(h, wmv_ref[...], preferred_element_type=jnp.float32) + bmv_ref[...]
    muvar_ref[...] = mv
    mu = mv[:, :E]
    log_var = mv[:, E:]

    # ------------- reparameterize -------------
    z = eps_ref[...] * jnp.exp(0.5 * log_var) + mu

    # ---------------- decoder ----------------
    d = jnp.maximum(
        jnp.dot(z, wd1_ref[...], preferred_element_type=jnp.float32) + bd1_ref[...], 0.0)
    d = jnp.maximum(
        jnp.dot(d, wd2_ref[...], preferred_element_type=jnp.float32) + bd2_ref[...], 0.0)
    d = jnp.dot(d, wdo_ref[...], preferred_element_type=jnp.float32) + bdo_ref[...]

    # decode(): sigmoid on categorical column groups (precomputed int mask)
    recon_ref[...] = jnp.where(mask_ref[...] != 0, jax.nn.sigmoid(d), d)


# --------------------------------- wrapper ---------------------------------

def _fold_bn(w, b, bn):
    """Fold eval-mode BatchNorm into the preceding Linear: y = (xW+b)*s + t."""
    gamma, beta, mean, var = bn[0], bn[1], bn[2], bn[3]
    scale = gamma / jnp.sqrt(var + BN_EPS)
    w_f = w * scale[None, :]
    b_f = (b - mean[None, :]) * scale[None, :] + beta[None, :]
    return w_f, b_f


def _const_spec(a):
    # Whole-array block, always block (0, 0): stays VMEM-resident across the grid.
    return pl.BlockSpec(a.shape, lambda i: (0,) * a.ndim)


def vae_forward(x, eps, cat_mask, p, *, block_b=None):
    """Pallas-backed forward. Returns [reconstruction, input_x, mu, log_var]."""
    x_in = x
    B, D = x.shape
    E = p["wmu"].shape[1]

    # ---- fold BN (eval) into linears; fuse fc_mu/fc_var (tiny host-side f32 work) ----
    w1, b1 = _fold_bn(p["w1"], p["b1"], p["bn1"])
    w2, b2 = _fold_bn(p["w2"], p["b2"], p["bn2"])
    wd1, bd1 = _fold_bn(p["wd1"], p["bd1"], p["bnd1"])
    wd2, bd2 = _fold_bn(p["wd2"], p["b_d2"], p["bnd2"])
    wmv = jnp.concatenate([p["wmu"], p["wvar"]], axis=1)   # [12, 2E]
    bmv = jnp.concatenate([p["bmu"], p["bvar"]], axis=1)   # [1, 2E]

    # ---- batch tiling: large tiles at scale, single padded tile for small batches ----
    if block_b is None:
        block_b = 1024 if B >= 1024 else ((B + 7) // 8) * 8
    n_blocks = pl.cdiv(B, block_b)
    B_pad = n_blocks * block_b
    if B_pad != B:
        x = jnp.pad(x, ((0, B_pad - B), (0, 0)))
        eps = jnp.pad(eps, ((0, B_pad - B), (0, 0)))

    weight_args = (w1, b1, w2, b2, wmv, bmv, wd1, bd1, wd2, bd2, p["wdo"], p["bdo"])

    in_specs = [
        pl.BlockSpec((block_b, D), lambda i: (i, 0)),   # x
        pl.BlockSpec((block_b, E), lambda i: (i, 0)),   # eps
        _const_spec(cat_mask),                          # int32 [1, D] mask
    ] + [_const_spec(a) for a in weight_args]

    out_specs = (
        pl.BlockSpec((block_b, D), lambda i: (i, 0)),        # recon
        pl.BlockSpec((block_b, 2 * E), lambda i: (i, 0)),    # mu || log_var
    )

    recon, muvar = pl.pallas_call(
        functools.partial(vae_forward_kernel, E),
        out_shape=(
            jax.ShapeDtypeStruct((B_pad, D), jnp.float32),
            jax.ShapeDtypeStruct((B_pad, 2 * E), jnp.float32),
        ),
        grid=(n_blocks,),
        in_specs=in_specs,
        out_specs=out_specs,
        compiler_params=pltpu.CompilerParams(
            dimension_semantics=("parallel",),   # batch axis -> megacore sharding on v7x
        ),
    )(x, eps, cat_mask, *weight_args)

    recon = recon[:B]
    mu = muvar[:B, :E]
    log_var = muvar[:B, E:]
    return [recon, x_in, mu, log_var]


# --------------------- deterministic parameter construction ---------------------

def _linear_init(key, fan_in, fan_out):
    # PyTorch nn.Linear default: U(-1/sqrt(fan_in), 1/sqrt(fan_in)); weight stored as W.T.
    kw, kb = jax.random.split(key)
    bound = 1.0 / (fan_in ** 0.5)
    w = jax.random.uniform(kw, (fan_in, fan_out), jnp.float32, -bound, bound)
    b = jax.random.uniform(kb, (1, fan_out), jnp.float32, -bound, bound)
    return w, b


def _bn_init(key, h):
    # Rows = (gamma, beta, running_mean, running_var). PyTorch defaults are
    # (1, 0, 0, 1); we use non-trivial values here to exercise the BN folding math.
    kg, kb, km, kv = jax.random.split(key, 4)
    gamma = jax.random.uniform(kg, (h,), jnp.float32, 0.5, 1.5)
    beta = jax.random.uniform(kb, (h,), jnp.float32, -0.5, 0.5)
    mean = jax.random.uniform(km, (h,), jnp.float32, -0.5, 0.5)
    var = jax.random.uniform(kv, (h,), jnp.float32, 0.5, 1.5)
    return jnp.stack([gamma, beta, mean, var])


def init_params(key, layers):
    data_size = layers[0]
    encoded_size = layers[-1]
    h1, h2 = layers[1], layers[2]  # hidden_dims = layers[1:-2]; last hidden must be 12
    ks = jax.random.split(key, 11)
    p = {}
    p["w1"], p["b1"] = _linear_init(ks[0], data_size, h1)
    p["bn1"] = _bn_init(ks[7], h1)
    p["w2"], p["b2"] = _linear_init(ks[1], h1, h2)
    p["bn2"] = _bn_init(ks[8], h2)
    p["wmu"], p["bmu"] = _linear_init(ks[2], 12, encoded_size)
    p["wvar"], p["bvar"] = _linear_init(ks[3], 12, encoded_size)
    p["wd1"], p["bd1"] = _linear_init(ks[4], encoded_size, h2)
    p["bnd1"] = _bn_init(ks[9], h2)
    p["wd2"], p["b_d2"] = _linear_init(ks[5], h2, h1)
    p["bnd2"] = _bn_init(ks[10], h1)
    p["wdo"], p["bdo"] = _linear_init(ks[6], h1, data_size)
    return p


# ------------------------------ pure-JAX reference -------------------------------

def ref_forward(x, eps, cat_mask, p):
    """Unfolded BN reference (matches PyTorch eval-mode math)."""
    def lin(h, w, b):
        return h @ w + b

    def bn(h, bnp):
        return (h - bnp[2:3]) / jnp.sqrt(bnp[3:4] + BN_EPS) * bnp[0:1] + bnp[1:2]

    h = jnp.maximum(bn(lin(x, p["w1"], p["b1"]), p["bn1"]), 0.0)
    h = jnp.maximum(bn(lin(h, p["w2"], p["b2"]), p["bn2"]), 0.0)
    mu = lin(h, p["wmu"], p["bmu"])
    lv = lin(h, p["wvar"], p["bvar"])
    z = eps * jnp.exp(0.5 * lv) + mu
    d = jnp.maximum(bn(lin(z, p["wd1"], p["bd1"]), p["bnd1"]), 0.0)
    d = jnp.maximum(bn(lin(d, p["wd2"], p["b_d2"]), p["bnd2"]), 0.0)
    d = lin(d, p["wdo"], p["bdo"])
    d = jnp.where(cat_mask != 0, jax.nn.sigmoid(d), d)
    return d, mu, lv


if __name__ == "__main__":
    # layers = [data_size, hidden..., 12, encoded_size]; last hidden dim must be 12
    # because the module hard-codes fc_mu = nn.Linear(12, encoded_size).
    layers = [16, 32, 12, 8]
    B = 10  # also exercises the batch-padding path (padded to a multiple of 8)

    key = jax.random.PRNGKey(0)
    k_par, k_x, k_eps = jax.random.split(key, 3)

    params = init_params(k_par, layers)
    x = jax.random.uniform(k_x, (B, layers[0]), jnp.float32)
    # torch.randn_like(std) -> deterministic Gaussian noise supplied from JAX PRNG.
    eps = jax.random.normal(k_eps, (B, layers[-1]), jnp.float32)

    # TODO(synk): data_interface.encoded_categorical_feature_indices is never set in
    # __init__ (external data config); using synthetic categorical column groups here.
    cat_groups = [[4, 5, 6, 7], [12, 13, 14, 15]]
    mask = jnp.zeros((1, layers[0]), jnp.int32)
    for g in cat_groups:
        mask = mask.at[0, g[0]:g[-1] + 1].set(1)

    recon, x_out, mu, log_var = vae_forward(x, eps, mask, params)
    jax.block_until_ready((recon, mu, log_var))

    r_ref, mu_ref, lv_ref = ref_forward(x, eps, mask, params)
    assert recon.shape == (B, layers[0]) and mu.shape == (B, layers[-1])
    assert jnp.allclose(recon, r_ref, atol=1e-4, rtol=1e-4)
    assert jnp.allclose(mu, mu_ref, atol=1e-4, rtol=1e-4)
    assert jnp.allclose(log_var, lv_ref, atol=1e-4, rtol=1e-4)

    print("KERNEL_OK")
</pallas_src>

<mosaic_0001>
module attributes {stable_mosaic.version = 11 : i64} {
  func.func @vae_forward_kernel(%arg0: i32, %arg1: memref<16x16xf32, #tpu.memory_space<vmem>>, %arg2: memref<16x8xf32, #tpu.memory_space<vmem>>, %arg3: memref<1x16xi32, #tpu.memory_space<vmem>>, %arg4: memref<16x32xf32, #tpu.memory_space<vmem>>, %arg5: memref<1x32xf32, #tpu.memory_space<vmem>>, %arg6: memref<32x12xf32, #tpu.memory_space<vmem>>, %arg7: memref<1x12xf32, #tpu.memory_space<vmem>>, %arg8: memref<12x16xf32, #tpu.memory_space<vmem>>, %arg9: memref<1x16xf32, #tpu.memory_space<vmem>>, %arg10: memref<8x12xf32, #tpu.memory_space<vmem>>, %arg11: memref<1x12xf32, #tpu.memory_space<vmem>>, %arg12: memref<12x32xf32, #tpu.memory_space<vmem>>, %arg13: memref<1x32xf32, #tpu.memory_space<vmem>>, %arg14: memref<32x16xf32, #tpu.memory_space<vmem>>, %arg15: memref<1x16xf32, #tpu.memory_space<vmem>>, %arg16: memref<16x16xf32, #tpu.memory_space<vmem>>, %arg17: memref<16x16xf32, #tpu.memory_space<vmem>>) attributes {dimension_semantics = [#tpu.dimension_semantics<parallel>], iteration_bounds = array<i64: 1>, scalar_prefetch = 0 : i64, scratch_operands = 0 : i64, tpu.core_type = #tpu.core_type<tc>, window_params = [{transform_indices = @transform_0, window_bounds = array<i64: 16, 16>}, {transform_indices = @transform_1, window_bounds = array<i64: 16, 8>}, {pipeline_mode = #tpu.pipeline_mode<synchronous>, transform_indices = @transform_2, window_bounds = array<i64: 1, 16>}, {pipeline_mode = #tpu.pipeline_mode<synchronous>, transform_indices = @transform_3, window_bounds = array<i64: 16, 32>}, {pipeline_mode = #tpu.pipeline_mode<synchronous>, transform_indices = @transform_4, window_bounds = array<i64: 1, 32>}, {pipeline_mode = #tpu.pipeline_mode<synchronous>, transform_indices = @transform_5, window_bounds = array<i64: 32, 12>}, {pipeline_mode = #tpu.pipeline_mode<synchronous>, transform_indices = @transform_6, window_bounds = array<i64: 1, 12>}, {pipeline_mode = #tpu.pipeline_mode<synchronous>, transform_indices = @transform_7, window_bounds = array<i64: 12, 16>}, {pipeline_mode = #tpu.pipeline_mode<synchronous>, transform_indices = @transform_8, window_bounds = array<i64: 1, 16>}, {pipeline_mode = #tpu.pipeline_mode<synchronous>, transform_indices = @transform_9, window_bounds = array<i64: 8, 12>}, {pipeline_mode = #tpu.pipeline_mode<synchronous>, transform_indices = @transform_10, window_bounds = array<i64: 1, 12>}, {pipeline_mode = #tpu.pipeline_mode<synchronous>, transform_indices = @transform_11, window_bounds = array<i64: 12, 32>}, {pipeline_mode = #tpu.pipeline_mode<synchronous>, transform_indices = @transform_12, window_bounds = array<i64: 1, 32>}, {pipeline_mode = #tpu.pipeline_mode<synchronous>, transform_indices = @transform_13, window_bounds = array<i64: 32, 16>}, {pipeline_mode = #tpu.pipeline_mode<synchronous>, transform_indices = @transform_14, window_bounds = array<i64: 1, 16>}, {transform_indices = @transform_15, window_bounds = array<i64: 16, 16>}, {transform_indices = @transform_16, window_bounds = array<i64: 16, 16>}]} {
    %c0 = arith.constant 0 : index
    %c0_0 = arith.constant 0 : index
    %0 = vector.load %arg1[%c0, %c0_0] : memref<16x16xf32, #tpu.memory_space<vmem>>, vector<16x16xf32>
    %c0_1 = arith.constant 0 : index
    %c0_2 = arith.constant 0 : index
    %1 = vector.load %arg4[%c0_1, %c0_2] : memref<16x32xf32, #tpu.memory_space<vmem>>, vector<16x32xf32>
    %cst = arith.constant dense<0.000000e+00> : vector<16x32xf32>
    %2 = tpu.matmul %0, %1, %cst {dimension_numbers = #tpu.dot_dimension_numbers<[1], [0], [0], [1], [0, 0, 1, 1], [], []>} : vector<16x16xf32>, vector<16x32xf32>, vector<16x32xf32> -> vector<16x32xf32>
    %c0_3 = arith.constant 0 : index
    %c0_4 = arith.constant 0 : index
    %3 = vector.load %arg5[%c0_3, %c0_4] : memref<1x32xf32, #tpu.memory_space<vmem>>, vector<1x32xf32>
    %4 = vector.broadcast %3 : vector<1x32xf32> to vector<16x32xf32>
    %5 = arith.addf %2, %4 : vector<16x32xf32>
    %cst_5 = arith.constant 0.000000e+00 : f32
    %6 = vector.broadcast %cst_5 : f32 to vector<16x32xf32>
    %7 = arith.maximumf %5, %6 : vector<16x32xf32>
    %c0_6 = arith.constant 0 : index
    %c0_7 = arith.constant 0 : index
    %8 = vector.load %arg6[%c0_6, %c0_7] : memref<32x12xf32, #tpu.memory_space<vmem>>, vector<32x12xf32>
    %cst_8 = arith.constant dense<0.000000e+00> : vector<16x12xf32>
    %9 = tpu.matmul %7, %8, %cst_8 {dimension_numbers = #tpu.dot_dimension_numbers<[1], [0], [0], [1], [0, 0, 1, 1], [], []>} : vector<16x32xf32>, vector<32x12xf32>, vector<16x12xf32> -> vector<16x12xf32>
    %c0_9 = arith.constant 0 : index
    %c0_10 = arith.constant 0 : index
    %10 = vector.load %arg7[%c0_9, %c0_10] : memref<1x12xf32, #tpu.memory_space<vmem>>, vector<1x12xf32>
    %11 = vector.broadcast %10 : vector<1x12xf32> to vector<16x12xf32>
    %12 = arith.addf %9, %11 : vector<16x12xf32>
    %cst_11 = arith.constant 0.000000e+00 : f32
    %13 = vector.broadcast %cst_11 : f32 to vector<16x12xf32>
    %14 = arith.maximumf %12, %13 : vector<16x12xf32>
    %c0_12 = arith.constant 0 : index
    %c0_13 = arith.constant 0 : index
    %15 = vector.load %arg8[%c0_12, %c0_13] : memref<12x16xf32, #tpu.memory_space<vmem>>, vector<12x16xf32>
    %cst_14 = arith.constant dense<0.000000e+00> : vector<16x16xf32>
    %16 = tpu.matmul %14, %15, %cst_14 {dimension_numbers = #tpu.dot_dimension_numbers<[1], [0], [0], [1], [0, 0, 1, 1], [], []>} : vector<16x12xf32>, vector<12x16xf32>, vector<16x16xf32> -> vector<16x16xf32>
    %c0_15 = arith.constant 0 : index
    %c0_16 = arith.constant 0 : index
    %17 = vector.load %arg9[%c0_15, %c0_16] : memref<1x16xf32, #tpu.memory_space<vmem>>, vector<1x16xf32>
    %18 = vector.broadcast %17 : vector<1x16xf32> to vector<16x16xf32>
    %19 = arith.addf %16, %18 : vector<16x16xf32>
    %c0_17 = arith.constant 0 : index
    %c0_18 = arith.constant 0 : index
    %20 = vector.load %arg17[%c0_17, %c0_18] : memref<16x16xf32, #tpu.memory_space<vmem>>, vector<16x16xf32>
    tpu.vector_store %arg17[%c0_17, %c0_18], %19 {strides = array<i32>} : memref<16x16xf32, #tpu.memory_space<vmem>>, vector<16x16xf32>,
    %21 = vector.extract_strided_slice %19 {offsets = [0, 0], sizes = [16, 8], strides = [1, 1]} : vector<16x16xf32> to vector<16x8xf32>
    %22 = vector.extract_strided_slice %19 {offsets = [0, 8], sizes = [16, 8], strides = [1, 1]} : vector<16x16xf32> to vector<16x8xf32>
    %c0_19 = arith.constant 0 : index
    %c0_20 = arith.constant 0 : index
    %23 = vector.load %arg2[%c0_19, %c0_20] : memref<16x8xf32, #tpu.memory_space<vmem>>, vector<16x8xf32>
    %cst_21 = arith.constant 5.000000e-01 : f32
    %24 = vector.broadcast %cst_21 : f32 to vector<16x8xf32>
    %25 = arith.mulf %24, %22 : vector<16x8xf32>
    %26 = math.exp %25 : vector<16x8xf32>
    %27 = arith.mulf %23, %26 : vector<16x8xf32>
    %28 = arith.addf %27, %21 : vector<16x8xf32>
    %c0_22 = arith.constant 0 : index
    %c0_23 = arith.constant 0 : index
    %29 = vector.load %arg10[%c0_22, %c0_23] : memref<8x12xf32, #tpu.memory_space<vmem>>, vector<8x12xf32>
    %cst_24 = arith.constant dense<0.000000e+00> : vector<16x12xf32>
    %30 = tpu.matmul %28, %29, %cst_24 {dimension_numbers = #tpu.dot_dimension_numbers<[1], [0], [0], [1], [0, 0, 1, 1], [], []>} : vector<16x8xf32>, vector<8x12xf32>, vector<16x12xf32> -> vector<16x12xf32>
    %c0_25 = arith.constant 0 : index
    %c0_26 = arith.constant 0 : index
    %31 = vector.load %arg11[%c0_25, %c0_26] : memref<1x12xf32, #tpu.memory_space<vmem>>, vector<1x12xf32>
    %32 = vector.broadcast %31 : vector<1x12xf32> to vector<16x12xf32>
    %33 = arith.addf %30, %32 : vector<16x12xf32>
    %cst_27 = arith.constant 0.000000e+00 : f32
    %34 = vector.broadcast %cst_27 : f32 to vector<16x12xf32>
    %35 = arith.maximumf %33, %34 : vector<16x12xf32>
    %c0_28 = arith.constant 0 : index
    %c0_29 = arith.constant 0 : index
    %36 = vector.load %arg12[%c0_28, %c0_29] : memref<12x32xf32, #tpu.memory_space<vmem>>, vector<12x32xf32>
    %cst_30 = arith.constant dense<0.000000e+00> : vector<16x32xf32>
    %37 = tpu.matmul %35, %36, %cst_30 {dimension_numbers = #tpu.dot_dimension_numbers<[1], [0], [0], [1], [0, 0, 1, 1], [], []>} : vector<16x12xf32>, vector<12x32xf32>, vector<16x32xf32> -> vector<16x32xf32>
    %c0_31 = arith.constant 0 : index
    %c0_32 = arith.constant 0 : index
    %38 = vector.load %arg13[%c0_31, %c0_32] : memref<1x32xf32, #tpu.memory_space<vmem>>, vector<1x32xf32>
    %39 = vector.broadcast %38 : vector<1x32xf32> to vector<16x32xf32>
    %40 = arith.addf %37, %39 : vector<16x32xf32>
    %cst_33 = arith.constant 0.000000e+00 : f32
    %41 = vector.broadcast %cst_33 : f32 to vector<16x32xf32>
    %42 = arith.maximumf %40, %41 : vector<16x32xf32>
    %c0_34 = arith.constant 0 : index
    %c0_35 = arith.constant 0 : index
    %43 = vector.load %arg14[%c0_34, %c0_35] : memref<32x16xf32, #tpu.memory_space<vmem>>, vector<32x16xf32>
    %cst_36 = arith.constant dense<0.000000e+00> : vector<16x16xf32>
    %44 = tpu.matmul %42, %43, %cst_36 {dimension_numbers = #tpu.dot_dimension_numbers<[1], [0], [0], [1], [0, 0, 1, 1], [], []>} : vector<16x32xf32>, vector<32x16xf32>, vector<16x16xf32> -> vector<16x16xf32>
    %c0_37 = arith.constant 0 : index
    %c0_38 = arith.constant 0 : index
    %45 = vector.load %arg15[%c0_37, %c0_38] : memref<1x16xf32, #tpu.memory_space<vmem>>, vector<1x16xf32>
    %46 = vector.broadcast %45 : vector<1x16xf32> to vector<16x16xf32>
    %47 = arith.addf %44, %46 : vector<16x16xf32>
    %c0_39 = arith.constant 0 : index
    %c0_40 = arith.constant 0 : index
    %48 = vector.load %arg3[%c0_39, %c0_40] : memref<1x16xi32, #tpu.memory_space<vmem>>, vector<1x16xi32>
    %c0_i32 = arith.constant 0 : i32
    %49 = vector.broadcast %c0_i32 : i32 to vector<1x16xi32>
    %50 = arith.cmpi ne, %48, %49 : vector<1x16xi32>
    %51 = arith.negf %47 : vector<16x16xf32>
    %52 = math.exp %51 : vector<16x16xf32>
    %cst_41 = arith.constant 1.000000e+00 : f32
    %53 = vector.broadcast %cst_41 : f32 to vector<16x16xf32>
    %54 = arith.addf %53, %52 : vector<16x16xf32>
    %55 = arith.divf %53, %54 : vector<16x16xf32>
    %56 = vector.shape_cast %50 : vector<1x16xi1> to vector<1x16xi1>
    %57 = vector.broadcast %56 : vector<1x16xi1> to vector<16x16xi1>
    %58 = arith.select %57, %55, %47 : vector<16x16xi1>, vector<16x16xf32>
    %c0_42 = arith.constant 0 : index
    %c0_43 = arith.constant 0 : index
    %59 = vector.load %arg16[%c0_42, %c0_43] : memref<16x16xf32, #tpu.memory_space<vmem>>, vector<16x16xf32>
    tpu.vector_store %arg16[%c0_42, %c0_43], %58 {strides = array<i32>} : memref<16x16xf32, #tpu.memory_space<vmem>>, vector<16x16xf32>,
    return
  }
  func.func @transform_0(%arg0: i32) -> (i32, i32) {
    %c0_i32 = arith.constant 0 : i32
    %c0_i32_0 = arith.constant 0 : i32
    return %arg0, %c0_i32 : i32, i32
  }
  func.func @transform_1(%arg0: i32) -> (i32, i32) {
    %c0_i32 = arith.constant 0 : i32
    %c0_i32_0 = arith.constant 0 : i32
    return %arg0, %c0_i32 : i32, i32
  }
  func.func @transform_2(%arg0: i32) -> (i32, i32) {
    %c0_i32 = arith.constant 0 : i32
    %c0_i32_0 = arith.constant 0 : i32
    %c0_i32_1 = arith.constant 0 : i32
    return %c0_i32, %c0_i32_0 : i32, i32
  }
  func.func @transform_3(%arg0: i32) -> (i32, i32) {
    %c0_i32 = arith.constant 0 : i32
    %c0_i32_0 = arith.constant 0 : i32
    %c0_i32_1 = arith.constant 0 : i32
    return %c0_i32, %c0_i32_0 : i32, i32
  }
  func.func @transform_4(%arg0: i32) -> (i32, i32) {
    %c0_i32 = arith.constant 0 : i32
    %c0_i32_0 = arith.constant 0 : i32
    %c0_i32_1 = arith.constant 0 : i32
    return %c0_i32, %c0_i32_0 : i32, i32
  }
  func.func @transform_5(%arg0: i32) -> (i32, i32) {
    %c0_i32 = arith.constant 0 : i32
    %c0_i32_0 = arith.constant 0 : i32
    %c0_i32_1 = arith.constant 0 : i32
    return %c0_i32, %c0_i32_0 : i32, i32
  }
  func.func @transform_6(%arg0: i32) -> (i32, i32) {
    %c0_i32 = arith.constant 0 : i32
    %c0_i32_0 = arith.constant 0 : i32
    %c0_i32_1 = arith.constant 0 : i32
    return %c0_i32, %c0_i32_0 : i32, i32
  }
  func.func @transform_7(%arg0: i32) -> (i32, i32) {
    %c0_i32 = arith.constant 0 : i32
    %c0_i32_0 = arith.constant 0 : i32
    %c0_i32_1 = arith.constant 0 : i32
    return %c0_i32, %c0_i32_0 : i32, i32
  }
  func.func @transform_8(%arg0: i32) -> (i32, i32) {
    %c0_i32 = arith.constant 0 : i32
    %c0_i32_0 = arith.constant 0 : i32
    %c0_i32_1 = arith.constant 0 : i32
    return %c0_i32, %c0_i32_0 : i32, i32
  }
  func.func @transform_9(%arg0: i32) -> (i32, i32) {
    %c0_i32 = arith.constant 0 : i32
    %c0_i32_0 = arith.constant 0 : i32
    %c0_i32_1 = arith.constant 0 : i32
    return %c0_i32, %c0_i32_0 : i32, i32
  }
  func.func @transform_10(%arg0: i32) -> (i32, i32) {
    %c0_i32 = arith.constant 0 : i32
    %c0_i32_0 = arith.constant 0 : i32
    %c0_i32_1 = arith.constant 0 : i32
    return %c0_i32, %c0_i32_0 : i32, i32
  }
  func.func @transform_11(%arg0: i32) -> (i32, i32) {
    %c0_i32 = arith.constant 0 : i32
    %c0_i32_0 = arith.constant 0 : i32
    %c0_i32_1 = arith.constant 0 : i32
    return %c0_i32, %c0_i32_0 : i32, i32
  }
  func.func @transform_12(%arg0: i32) -> (i32, i32) {
    %c0_i32 = arith.constant 0 : i32
    %c0_i32_0 = arith.constant 0 : i32
    %c0_i32_1 = arith.constant 0 : i32
    return %c0_i32, %c0_i32_0 : i32, i32
  }
  func.func @transform_13(%arg0: i32) -> (i32, i32) {
    %c0_i32 = arith.constant 0 : i32
    %c0_i32_0 = arith.constant 0 : i32
    %c0_i32_1 = arith.constant 0 : i32
    return %c0_i32, %c0_i32_0 : i32, i32
  }
  func.func @transform_14(%arg0: i32) -> (i32, i32) {
    %c0_i32 = arith.constant 0 : i32
    %c0_i32_0 = arith.constant 0 : i32
    %c0_i32_1 = arith.constant 0 : i32
    return %c0_i32, %c0_i32_0 : i32, i32
  }
  func.func @transform_15(%arg0: i32) -> (i32, i32) {
    %c0_i32 = arith.constant 0 : i32
    %c0_i32_0 = arith.constant 0 : i32
    return %arg0, %c0_i32 : i32, i32
  }
  func.func @transform_16(%arg0: i32) -> (i32, i32) {
    %c0_i32 = arith.constant 0 : i32
    %c0_i32_0 = arith.constant 0 : i32
    return %arg0, %c0_i32 : i32, i32
  }
}

</mosaic_0001>

<bundles_post_ra>
// kernel: tpu_custom_call.1
= control target key start
LH: loop header
LB: loop body
LE: loop exit
PB: predicated region body
PF: predicated region fallthrough
CT: control target
= control target key end

     0   :  { %s693_s0 = inlined_call_operand.vmem [shape: f32[16,16], index: 0, kind: input, shape index: {}]   ;;  %s694_s1 = inlined_call_operand.vmem [shape: f32[16,8], index: 1, kind: input, shape index: {}]   ;;  %s695_s2 = inlined_call_operand.vmem [shape: s32[1,16], index: 2, kind: input, shape index: {}]   ;;  %s696_s3 = inlined_call_operand.vmem [shape: f32[16,32], index: 3, kind: input, shape index: {}]   ;;  %s697_s4 = inlined_call_operand.vmem [shape: f32[1,32], index: 4, kind: input, shape index: {}]   ;;  %s698_s5 = inlined_call_operand.vmem [shape: f32[32,12], index: 5, kind: input, shape index: {}]   ;;  %s699_s6 = inlined_call_operand.vmem [shape: f32[1,12], index: 6, kind: input, shape index: {}]   ;;  %s700_s7 = inlined_call_operand.vmem [shape: f32[12,16], index: 7, kind: input, shape index: {}]   ;;  %s701_s8 = inlined_call_operand.vmem [shape: f32[1,16], index: 8, kind: input, shape index: {}]   ;;  %s702_s9 = inlined_call_operand.vmem [shape: f32[8,12], index: 9, kind: input, shape index: {}]   ;;  %s703_s10 = inlined_call_operand.vmem [shape: f32[1,12], index: 10, kind: input, shape index: {}]   ;;  %s704_s11 = inlined_call_operand.vmem [shape: f32[12,32], index: 11, kind: input, shape index: {}]   ;;  %s705_s12 = inlined_call_operand.vmem [shape: f32[1,32], index: 12, kind: input, shape index: {}]   ;;  %s706_s13 = inlined_call_operand.vmem [shape: f32[32,16], index: 13, kind: input, shape index: {}]   ;;  %s707_s14 = inlined_call_operand.vmem [shape: f32[1,16], index: 14, kind: input, shape index: {}]   ;;  %s708_s15 = inlined_call_operand.hbm [shape: f32[16,16], index: 15, kind: output, shape index: {0}]   ;;  %s709_s16 = inlined_call_operand.hbm [shape: f32[16,16], index: 16, kind: output, shape index: {1}]  }
   0x1   :  { %711 = sst [smem:[#allocation8_spill]] %s693_s0 }
   0x2   :  { %22 = vsyncpa [#allocation3], 0  ;;  %v57_v0 = vld [vmem:[%s696_s3 + $0x8] sm:$0xff]  ;;  %v56_v1 = vld [vmem:[%s696_s3] sm:$0xff]  ;;  %s712_s27 = sld [smem:[#allocation8_spill]]  ;;  %vm62_vm0 = vcmask 130048  }
   0x3   :  { %83 = vmatpush.msra.mxu0 %v57_v0  ;;  %409 = vmatpush.msra.mxu2 %v57_v0  ;;  %v97_v4 = vld [vmem:[%s698_s5 + $0x18] sm:$0xff] }
   0x4   :  { %121 = vmatpush.msra.mxu1 %v97_v4 }
   0x5   :  { %84 = vmatpush.msra.mxu0 %v56_v1  ;;  %410 = vmatpush.msra.mxu2 %v56_v1 }
   0x8   :  { %v54_v2 = vld [vmem:[%s712_s27] sm:$0xff]  ;;  %v55_v3 = vld [vmem:[%s712_s27 + $0x8] sm:$0xff] }
   0x9   :  { %393 = vmatmul.msk.f32.vlgmr.msra.gmra.mxu0 %vm62_vm0, %v54_v2  ;;  %394 = vmatmul.msk.f32.vlgmr.msra.gmra.mxu2 %vm62_vm0, %v55_v3 }
   0xa   :  { %23 = vsyncpa [#allocation5], 0  ;;  %v96_v5 = vld [vmem:[%s698_s5 + $0x10] sm:$0xff]  ;;  %v95_v6 = vld [vmem:[%s698_s5 + $0x8] sm:$0xff]  ;;  %vm147_vm1 = vcmask 1043456   ;;  %vm102_vm2 = vcmask 261120  }
   0xb   :  { %122 = vmatpush.msra.mxu1 %v96_v5  ;;  %v94_v7 = vld [vmem:[%s698_s5] sm:$0xff]  ;;  %v135_v8 = vld [vmem:[%s700_s7 + $0x8] sm:$0xf]  ;;  %vm140_vm3 = vcmask 97280   ;;  %vm201_vm4 = vcmask 64512   ;;  %v276_v46 = vld [vmem:[%s706_s13 + $0x18] sm:$0xff] }
   0xc   :  { %397 = vmatpush.msk.msrb.mxu2 %vm147_vm1, %v135_v8  ;;  %v418_v9 = vld [vmem:[%s697_s4] ss:$0 sm:$0xff]  ;;  %v177_v40 = vld [vmem:[%s694_s1 + $0x8] sm:$0xff]  ;;  %299 = vmatpush.msrb.mxu0 %v276_v46  ;;  %v275_v54 = vld [vmem:[%s706_s13 + $0x10] sm:$0xff]  ;;  %s489_s4 = smov [#allocation4]   ;;  %s363_s18 = sshll.u32 %s708_s15, 4  ;;  %s364_s18 = int_to_ptr.hbm [resolvable:$true] %s363_s18 }
   0xd   :  { %123 = vmatpush.msra.mxu1 %v95_v6  ;;  %v134_v16 = vld [vmem:[%s700_s7] sm:$0xff]  ;;  %v234_v44 = vld [vmem:[%s704_s11 + $0x8] sm:$0xf]  ;;  %s374_s29 = sshll.u32 %s489_s4, 4  ;;  %s375_s29 = int_to_ptr.vmem [resolvable:$true] %s374_s29 }
   0xe   :  { %166 = vmatpush.msrb.mxu2 %v134_v16  ;;  %v419_v17 = vld [vmem:[%s699_s6] ss:$0 sm:$0xff]  ;;  %s488_s6 = smov 120   ;;  %300 = vmatpush.msrb.mxu0 %v275_v54  ;;  %v274_v55 = vld [vmem:[%s706_s13 + $0x8] sm:$0xff] }
   0xf   :  { %124 = vmatpush.msra.mxu1 %v94_v7  ;;  %v196_v24 = vld [vmem:[%s702_s9] sm:$0xff] }
  0x10   :  { %411 = vmatpush.msra.mxu3 %v196_v24  ;;  %v420_v25 = vld [vmem:[%s701_s8] ss:$0 sm:$0xff]  ;;  %301 = vmatpush.msrb.mxu0 %v274_v55 }
  0x11   :  { %223 = vmatpush.msrb.mxu1 %v196_v24  ;;  %v176_v36 = vld [vmem:[%s694_s1] sm:$0xff] }
  0x12   :  { %402 = vmatpush.msk.msrb.mxu3 %vm147_vm1, %v234_v44  ;;  %v233_v45 = vld [vmem:[%s704_s11] sm:$0xff] }
  0x13   :  { %v421_v47 = vld [vmem:[%s703_s10] ss:$0 sm:$0xff] }
  0x14   :  { %263 = vmatpush.msrb.mxu3 %v233_v45  ;;  %v273_v56 = vld [vmem:[%s706_s13] sm:$0xff]  ;;  %s376_s13 = sshll.u32 %s709_s16, 4  ;;  %s377_s13 = int_to_ptr.hbm [resolvable:$true] %s376_s13 }
  0x15   :  { %302 = vmatpush.msrb.mxu0 %v273_v56  ;;  %v422_v57 = vld [vmem:[%s705_s12] ss:$0 sm:$0xff]  ;;  %s491_s12 = smov 8  }
  0x16   :  { %v423_v0 = vld [vmem:[%s707_s14] ss:$0 sm:$0xff] }
  0x17   :  { %v310_v7 = vld [vmem:[%s695_s2] sm:$0x1]  ;;  %s493_s2 = smov [#allocation2]  }
  0x18   :  { %vm311_vm5 = vcmp.ne.s32.totalorder %v310_v7, 0  ;;  %s361_s14 = sshll.u32 %s493_s2, 4  ;;  %s362_s14 = int_to_ptr.vmem [resolvable:$true] %s361_s14 }
  0x86   :  { %v86_v10 = vpop.f32.mrf.mxu0 }
  0x87   :  { %v87_v11 = vadd.f32 %v418_v9, %v86_v10 }
  0x89   :  { %v92_v12 = vmax.f32 %v87_v11, 0.0 }
  0x8b   :  { %395 = vmatmul.msk.f32.vlgmr.msra.gmra.mxu1 %vm102_vm2, %v92_v12  ;;  %v492_v12 = vmov 0  }
  0x8c   :  { %v89_v13 = vpop.f32.mrf.mxu2 }
  0x8d   :  { %v90_v14 = vadd.f32 %v418_v9, %v89_v13  ;;  %v350_v13 = vsel %vm311_vm5, 1, %v492_v12 }
  0x8e   :  { %v351_v16 = vperm.slane %v350_v13, 0 }
  0x8f   :  { %v93_v15 = vmax.f32 %v90_v14, 0.0 }
  0x90   :  { %vm677_vm9 = vcmp.eq.s32.totalorder %v351_v16, 1 }
  0x93   :  { %396 = vmatmul.msk.f32.gmra.mxu1 %vm102_vm2, %v93_v15 }
 0x108   :  { %v126_v18 = vpop.f32.mrf.mxu1 }
 0x109   :  { %v127_v19 = vadd.f32 %v419_v17, %v126_v18 }
 0x10b   :  { %v132_v20 = vmax.f32 %v127_v19, 0.0 }
 0x10d   :  { %398 = vmatmul.msk.f32.vlgmr.msrb.gmra.mxu2 %vm140_vm3, %v132_v20 }
 0x110   :  { %v129_v21 = vpop.f32.mrf.mxu1 }
 0x111   :  { %v130_v22 = vadd.f32 %v419_v17, %v129_v21 }
 0x113   :  { %v133_v23 = vmax.f32 %v130_v22, 0.0 }
 0x115   :  { %399 = vmatmul.msk.f32.gmra.mxu2 %vm140_vm3, %v133_v23 }
 0x190   :  { %v168_v26 = vpop.f32.mrf.mxu2 }
 0x191   :  { %v169_v27 = vadd.f32 %v420_v25, %v168_v26 }
 0x193   :  { %174 = vst.msk [vmem:[#allocation4] sm:$0xff] %vm62_vm0, %v169_v27  ;;  %v178_v28 = vmul.f32 0.5, %v169_v27 }
 0x195   :  { %v180_v29 = vmul.f32 1.442695, %v178_v28 }
 0x197   :  { %424 = vpow2.f32 %v180_v29 }
 0x198   :  { %v171_v30 = vpop.f32.mrf.mxu2 }
 0x199   :  { %v172_v31 = vadd.f32 %v420_v25, %v171_v30 }
 0x19b   :  { %175 = vst.msk [vmem:[#allocation4 + $0x8] sm:$0xff] %vm62_vm0, %v172_v31  ;;  %v179_v32 = vmul.f32 0.5, %v172_v31 }
 0x19d   :  { %v425_v33 = vpop.eup %424  ;;  %v182_v34 = vmul.f32 1.442695, %v179_v32 }
 0x19e   :  { %186 = vrot.lane.b32.xlu0 %v425_v33, %s488_s6 }
 0x19f   :  { %426 = vpow2.f32 %v182_v34 }
 0x1a5   :  { %v427_v35 = vpop.eup %426 }
 0x1a6   :  { %188 = vrot.lane.b32.xlu0 %v427_v35, %s488_s6  ;;  %s490_s6 = smov 128  }
 0x1a7   :  { %382 = dma.vmem_to_hbm [thread:$0]  %s375_s29, 256, %s377_s13, [#allocation5], %s490_s6, %s490_s6, %s491_s12  }
 0x210   :  { %v187_v37 = vpop.permute.xlu0 %186 }
 0x211   :  { %v192_v38 = vmul.f32 %v187_v37, %v176_v36 }
 0x213   :  { %v194_v39 = vadd.f32 %v192_v38, %v169_v27 }
 0x215   :  { %400 = vmatmul.msk.f32.vlgmr.msrb.gmra.mxu1 %vm201_vm4, %v194_v39 }
 0x218   :  { %v189_v41 = vpop.permute.xlu0 %188 }
 0x219   :  { %v193_v42 = vmul.f32 %v189_v41, %v177_v40 }
 0x21b   :  { %v195_v43 = vadd.f32 %v193_v42, %v172_v31 }
 0x21d   :  { %401 = vmatmul.msk.f32.vlgmr.msra.gmra.mxu3 %vm201_vm4, %v195_v43 }
 0x292   :  { %v225_v48 = vpop.f32.mrf.mxu1 }
 0x293   :  { %v226_v49 = vadd.f32 %v421_v47, %v225_v48 }
 0x295   :  { %v231_v50 = vmax.f32 %v226_v49, 0.0 }
 0x297   :  { %403 = vmatmul.msk.f32.vlgmr.msrb.gmra.mxu3 %vm140_vm3, %v231_v50 }
 0x2a0   :  { %v228_v51 = vpop.f32.mrf.mxu3 }
 0x2a1   :  { %v229_v52 = vadd.f32 %v421_v47, %v228_v51 }
 0x2a3   :  { %v232_v53 = vmax.f32 %v229_v52, 0.0 }
 0x2a5   :  { %404 = vmatmul.msk.f32.gmra.mxu3 %vm140_vm3, %v232_v53 }
 0x31a   :  { %v265_v58 = vpop.f32.mrf.mxu3 }
 0x31b   :  { %v266_v59 = vadd.f32 %v422_v57, %v265_v58 }
 0x31d   :  { %v271_v60 = vmax.f32 %v266_v59, 0.0 }
 0x31f   :  { %405 = vmatmul.msk.f32.vlgmr.msrb.gmra.mxu0 %vm102_vm2, %v271_v60 }
 0x328   :  { %v268_v61 = vpop.f32.mrf.mxu3 }
 0x329   :  { %v269_v62 = vadd.f32 %v422_v57, %v268_v61 }
 0x32b   :  { %v272_v63 = vmax.f32 %v269_v62, 0.0 }
 0x32d   :  { %406 = vmatmul.msk.f32.gmra.mxu0 %vm102_vm2, %v272_v63 }
 0x39c   :  { %v304_v1 = vpop.f32.mrf.mxu0 }
 0x39d   :  { %v305_v2 = vadd.f32 %v423_v0, %v304_v1 }
 0x39f   :  { %v407_v3 = vmul.f32 -1.442695, %v305_v2 }
 0x3a1   :  { %428 = vpow2.f32 %v407_v3 }
 0x3a7   :  { %v429_v4 = vpop.eup %428 }
 0x3a8   :  { %v318_v5 = vadd.f32 1.0, %v429_v4 }
 0x3aa   :  { %430 = vrcp.f32 %v318_v5  ;;  %v307_v6 = vpop.f32.mrf.mxu0  ;;  %v331_v15 = vand.u32 2147483648, %v318_v5  ;;  %v329_v19 = vand.u32 2147483647, %v318_v5  ;;  %vm325_vm7 = vweird.f32 %v318_v5 }
 0x3ab   :  { %v308_v8 = vadd.f32 %v423_v0, %v307_v6 }
 0x3ac   :  { %v332_v22 = vor.u32 1.1754944e-38, %v331_v15  ;;  %vm330_vm10 = vcmp.eq.f32.partialorder %v329_v19, 8.507059e+37 }
 0x3ad   :  { %v408_v9 = vmul.f32 -1.442695, %v308_v8 }
 0x3af   :  { %432 = vpow2.f32 %v408_v9 }
 0x3b0   :  { %v431_v10 = vpop.eup %430 }
 0x3b1   :  { %v321_v11 = vmul.f32 %v431_v10, %v318_v5  ;;  %vm326_vm6 = vweird.f32 %v431_v10 }
 0x3b2   :  { %vm327_vm8 = vmor %vm325_vm7, %vm326_vm6 }
 0x3b3   :  { %v322_v14 = vsub.f32 1.0, %v321_v11 }
 0x3b5   :  { %v433_v17 = vpop.eup %432  ;;  %v323_v18 = vmul.f32 %v431_v10, %v322_v14 }
 0x3b6   :  { %v319_v20 = vadd.f32 1.0, %v433_v17 }
 0x3b7   :  { %v324_v21 = vadd.f32 %v431_v10, %v323_v18 }
 0x3b8   :  { %434 = vrcp.f32 %v319_v20  ;;  %v346_v30 = vand.u32 2147483648, %v319_v20  ;;  %v344_v32 = vand.u32 2147483647, %v319_v20  ;;  %vm340_vm12 = vweird.f32 %v319_v20 }
 0x3b9   :  { %v328_v24 = vsel %vm327_vm8, %v431_v10, %v324_v21 }
 0x3ba   :  { %v333_v25 = vsel %vm330_vm10, %v332_v22, %v328_v24  ;;  %v347_v34 = vor.u32 1.1754944e-38, %v346_v30  ;;  %vm345_vm14 = vcmp.eq.f32.partialorder %v344_v32, 8.507059e+37 }
 0x3bb   :  { %v353_v26 = vsel %vm677_vm9, %v333_v25, %v305_v2 }
 0x3bc   :  { %355 = vst.msk [vmem:[#allocation2] sm:$0xff] %vm62_vm0, %v353_v26 }
 0x3be   :  { %v435_v27 = vpop.eup %434 }
 0x3bf   :  { %v336_v28 = vmul.f32 %v435_v27, %v319_v20  ;;  %vm341_vm11 = vweird.f32 %v435_v27 }
 0x3c0   :  { %vm342_vm13 = vmor %vm340_vm12, %vm341_vm11 }
 0x3c1   :  { %v337_v29 = vsub.f32 1.0, %v336_v28 }
 0x3c3   :  { %v338_v31 = vmul.f32 %v435_v27, %v337_v29 }
 0x3c5   :  { %v339_v33 = vadd.f32 %v435_v27, %v338_v31 }
 0x3c7   :  { %v343_v35 = vsel %vm342_vm13, %v435_v27, %v339_v33 }
 0x3c8   :  { %v348_v36 = vsel %vm345_vm14, %v347_v34, %v343_v35 }
 0x3c9   :  { %v354_v37 = vsel %vm677_vm9, %v348_v36, %v308_v8 }
 0x3ca   :  { %356 = vst.msk [vmem:[#allocation2 + $0x8] sm:$0xff] %vm62_vm0, %v354_v37 }
 0x3cb   :  { %369 = dma.vmem_to_hbm [thread:$0]  %s362_s14, 256, %s364_s18, [#allocation3], %s490_s6, %s490_s6, %s491_s12  }
 0x3cc   :  { %484 = dma.done.wait [#allocation3], 256  }
 0x3cd   :  { %485 = vsyncadd [#allocation3], 4294967040 }
 0x3ce   :  { %486 = dma.done.wait [#allocation5], 256  }
 0x3cf   :  { %487 = vsyncadd [#allocation5], 4294967040 }
 0x3d0   :  { %391 = vsyncpa [#allocation3], 1 }
 0x3d1   :  { %392 = vsyncpa [#allocation5], 1 }

</bundles_post_ra>
